<compile_context>
chip_gen: v7x
topology: tpu7x:2x2x1
jax: 0.10.0
libtpu: 0.0.40
codegen_flags: <defaults>
</compile_context>

<pallas_src>
import functools
import math

import jax
import jax.numpy as jnp
from jax import lax
from jax.experimental import pallas as pl
from jax.experimental.pallas import tpu as pltpu

_EPS = 1e-8
_LANE = 128


def _channel_group_sum(x, *, packed, n_steps, fold):
    """Channel sums per spatial position.

    packed : strided-sublane roll+add tree on an (8, T) tile -> (fold, T),
             row g holds the channel sum of the positions in fold-group g.
    general: plain sublane reduce on a (C, T) tile -> (1, T).
    """
    if not packed:
        return jnp.sum(x, axis=0, keepdims=True)
    for k in range(n_steps):
        x = x + pltpu.roll(x, shift=8 >> (k + 1), axis=0)
    return x[:fold, :]


def _loss_kernel(pred_ref, targ_ref, mse_out_ref, dir_out_ref, mse_acc, dir_acc, *,
                 packed, fold, n_steps, jper, tile, lane_extent, need_mask):
    s = pl.program_id(1)          # lane-axis "parallel" split (megacore / v7x)
    j = pl.program_id(2)          # lane-tile reduction axis

    @pl.when(j == 0)
    def _():
        mse_acc[...] = jnp.zeros_like(mse_acc)
        dir_acc[...] = jnp.zeros_like(dir_acc)

    p = pred_ref[...].astype(jnp.float32)   # (rows, T)
    t = targ_ref[...].astype(jnp.float32)

    diff = p - t
    red = functools.partial(_channel_group_sum, packed=packed, n_steps=n_steps, fold=fold)
    pt = red(p * t)          # (fold, T)
    pp = red(p * p)
    tt = red(t * t)
    dsq = red(diff * diff)   # direct diff^2 path: no cancellation, no (rows,T) acc RMW
    # TODO(synk): on v7x, offload these channel sums to the idle MXU via a
    # ones-vector dot_general to relieve the vector-extended (XLU) slots.

    # ATen formulation: w12 * rsqrt(clamp_min(w1*w2, eps^2)) — single EUP rsqrt.
    dir_c = 1.0 - pt * lax.rsqrt(jnp.maximum(pp * tt, _EPS * _EPS))

    if need_mask:
        # Lane-validity mask for a (possibly partial) last tile.
        valid = lane_extent - (s * jper + j) * tile
        lane_idx = lax.broadcasted_iota(jnp.int32, dsq.shape, dimension=1)
        in_range = lane_idx < valid
        dsq = jnp.where(in_range, dsq, 0.0)
        dir_c = jnp.where(in_range, dir_c, 0.0)

    mse_acc[...] += dsq
    dir_acc[...] += dir_c

    # Epilogue (once per (b, s) slice): single cross-lane reduce, lane-dense store.
    @pl.when(j == pl.num_programs(2) - 1)
    def _():
        mse_out_ref[...] = jnp.broadcast_to(jnp.sum(mse_acc[...]), mse_out_ref.shape)
        dir_out_ref[...] = jnp.broadcast_to(jnp.sum(dir_acc[...]), dir_out_ref.shape)


def _vmem_plan():
    """Generation-aware VMEM planning: (tile-sizing budget, requested scoped limit)."""
    try:
        cap = pltpu.get_tpu_info().vmem_capacity_bytes   # 128 MiB v5e/v6e, 64 MiB/TC v7x
    except Exception:
        cap = 64 * 1024 * 1024                           # conservative fallback
    limit = min(int(0.75 * cap), 64 * 1024 * 1024)
    budget = int(0.6 * limit)
    return budget, limit


def _pick_tile(rows, lane_extent, budget_bytes, max_lane_tile=None):
    """Largest lane tile T fitting the budget (2 double-buffered inputs + accumulators)."""
    per_lane_bytes = (2 * 2 * rows + 2 * 8) * 4          # inputs + (padded) f32 accumulators
    max_t = max(_LANE, budget_bytes // per_lane_bytes)
    if max_lane_tile is not None:
        max_t = min(max_t, max(int(max_lane_tile), _LANE))
    if lane_extent <= max_t:
        return int(lane_extent)                          # full row (exempt from 128 rule)
    return int((max_t // _LANE) * _LANE)                 # tiled; tail handled by lane mask


def mse_and_direction_loss(pred, target, cosine_sim_dim: int = 1,
                           max_lane_tile=None, force_mask: bool = False):
    """Matches MSEAndDirectionLoss.forward for 4-D NCHW inputs (cosine dim = 1)."""
    assert cosine_sim_dim == 1, "kernel built for channel-dim cosine similarity"
    assert pred.shape == target.shape
    B, C, H, W = pred.shape
    HW = H * W
    total_elems = B * C * HW
    n_positions = B * HW

    packed = (C in (1, 2, 4, 8)) and (HW % (8 // C) == 0)
    if packed:
        fold = 8 // C                      # spatial groups folded into sublanes
        rows = 8
        n_steps = int(math.log2(C))
        lane_extent = (C * HW) // 8
    else:
        fold = 1
        rows = C
        n_steps = 0
        lane_extent = HW

    # Free, contiguous views of NCHW — no transpose, no extra HBM traffic.
    pred_v = pred.reshape(B, rows, lane_extent)
    targ_v = target.reshape(B, rows, lane_extent)

    budget, vmem_limit = _vmem_plan()
    T = _pick_tile(rows, lane_extent, budget, max_lane_tile)
    j_total = int(pl.cdiv(lane_extent, T))
    need_mask = (lane_extent % T != 0) or force_mask

    # v7x has 2 TensorCores: when the batch axis can't feed them, split the lane
    # axis across a second "parallel" grid axis (harmless on v5e/v6e).
    S = 2 if (B == 1 and j_total % 2 == 0 and j_total >= 2) else 1
    jper = int(j_total // S)

    grid = (B, S, jper)
    in_spec = pl.BlockSpec((None, rows, T), lambda b, s, j: (b, 0, s * jper + j))
    out_spec = pl.BlockSpec((1, 1, _LANE), lambda b, s, j: (b, s, 0))

    kernel = functools.partial(
        _loss_kernel, packed=packed, fold=fold, n_steps=n_steps,
        jper=jper, tile=T, lane_extent=lane_extent, need_mask=need_mask)

    mse_part, dir_part = pl.pallas_call(
        kernel,
        out_shape=(
            jax.ShapeDtypeStruct((B, S, _LANE), jnp.float32),
            jax.ShapeDtypeStruct((B, S, _LANE), jnp.float32),
        ),
        grid_spec=pltpu.PrefetchScalarGridSpec(
            num_scalar_prefetch=0,
            grid=grid,
            in_specs=[in_spec, in_spec],
            out_specs=(out_spec, out_spec),
            scratch_shapes=[
                pltpu.VMEM((fold, T), jnp.float32),   # per-lane MSE partials
                pltpu.VMEM((fold, T), jnp.float32),   # per-lane (1 - cos) partials
            ],
        ),
        compiler_params=pltpu.CompilerParams(
            dimension_semantics=("parallel", "parallel", "arbitrary"),
            vmem_limit_bytes=vmem_limit,
        ),
    )(pred_v, targ_v)

    mse = jnp.sum(mse_part[:, :, 0]) / jnp.float32(total_elems)
    direction = jnp.sum(dir_part[:, :, 0]) / jnp.float32(n_positions)
    return mse + direction


def _reference_loss(pred, target, dim=1, eps=_EPS):
    """Pure-JAX reference mirroring F.mse_loss + F.cosine_similarity."""
    mse = jnp.mean((pred - target) ** 2)
    dot = jnp.sum(pred * target, axis=dim)
    pn2 = jnp.sum(pred * pred, axis=dim)
    tn2 = jnp.sum(target * target, axis=dim)
    cos = dot / jnp.maximum(jnp.sqrt(pn2 * tn2), eps)
    return mse + jnp.mean(1.0 - cos)


if __name__ == "__main__":
    root = jax.random.PRNGKey(0)

    cases = [
        # Primary NCHW shape: packed sublane path (C=4 -> fold=2, full 8-row tiles).
        dict(shape=(2, 4, 16, 16)),
        # Multi-tile lane axis, S=2 "parallel" split (B=1), mask code path enabled.
        dict(shape=(1, 4, 16, 32), max_lane_tile=128, force_mask=True),
        # Channel count that is not a power of two: general channels-on-sublanes path.
        dict(shape=(1, 3, 8, 8)),
    ]

    for i, case in enumerate(cases):
        shape = case.pop("shape")
        k1, k2 = jax.random.split(jax.random.fold_in(root, i))
        pred = jax.random.normal(k1, shape, dtype=jnp.float32)
        target = jax.random.normal(k2, shape, dtype=jnp.float32)

        loss = mse_and_direction_loss(pred, target, **case)
        jax.block_until_ready(loss)

        ref = _reference_loss(pred, target)
        assert jnp.allclose(loss, ref, rtol=1e-5, atol=1e-5), (shape, loss, ref)

    print("KERNEL_OK")
</pallas_src>

<mosaic_0001>
module attributes {stable_mosaic.version = 11 : i64} {
  func.func @_loss_kernel(%arg0: i32, %arg1: i32, %arg2: i32, %arg3: memref<1x8x128xf32, #tpu.memory_space<vmem>>, %arg4: memref<1x8x128xf32, #tpu.memory_space<vmem>>, %arg5: memref<1x1x128xf32, #tpu.memory_space<vmem>>, %arg6: memref<1x1x128xf32, #tpu.memory_space<vmem>>, %arg7: memref<2x128xf32, #tpu.memory_space<vmem>>, %arg8: memref<2x128xf32, #tpu.memory_space<vmem>>) attributes {dimension_semantics = [#tpu.dimension_semantics<parallel>, #tpu.dimension_semantics<parallel>, #tpu.dimension_semantics<arbitrary>], iteration_bounds = array<i64: 2, 1, 1>, scalar_prefetch = 0 : i64, scratch_operands = 2 : i64, tpu.core_type = #tpu.core_type<tc>, window_params = [{transform_indices = @transform_0, window_bounds = array<i64: 1, 8, 128>}, {transform_indices = @transform_1, window_bounds = array<i64: 1, 8, 128>}, {transform_indices = @transform_2, window_bounds = array<i64: 1, 1, 128>}, {transform_indices = @transform_3, window_bounds = array<i64: 1, 1, 128>}]} {
    %c0_i32 = arith.constant 0 : i32
    %0 = arith.cmpi eq, %arg2, %c0_i32 : i32
    %1 = arith.extui %0 : i1 to i32
    %c0_i32_0 = arith.constant 0 : i32
    %2 = arith.cmpi ne, %1, %c0_i32_0 : i32
    scf.if %2 {
      %cst_23 = arith.constant 0.000000e+00 : f32
      %48 = vector.broadcast %cst_23 : f32 to vector<2x128xf32>
      %c0_24 = arith.constant 0 : index
      %c0_25 = arith.constant 0 : index
      %49 = vector.load %arg7[%c0_24, %c0_25] : memref<2x128xf32, #tpu.memory_space<vmem>>, vector<2x128xf32>
      tpu.vector_store %arg7[%c0_24, %c0_25], %48 {strides = array<i32>} : memref<2x128xf32, #tpu.memory_space<vmem>>, vector<2x128xf32>,
      %cst_26 = arith.constant 0.000000e+00 : f32
      %50 = vector.broadcast %cst_26 : f32 to vector<2x128xf32>
      %c0_27 = arith.constant 0 : index
      %c0_28 = arith.constant 0 : index
      %51 = vector.load %arg8[%c0_27, %c0_28] : memref<2x128xf32, #tpu.memory_space<vmem>>, vector<2x128xf32>
      tpu.vector_store %arg8[%c0_27, %c0_28], %50 {strides = array<i32>} : memref<2x128xf32, #tpu.memory_space<vmem>>, vector<2x128xf32>,
    } else {
    }
    %c0 = arith.constant 0 : index
    %c0_1 = arith.constant 0 : index
    %c0_2 = arith.constant 0 : index
    %3 = vector.load %arg3[%c0, %c0_1, %c0_2] : memref<1x8x128xf32, #tpu.memory_space<vmem>>, vector<1x8x128xf32>
    %4 = vector.shape_cast %3 : vector<1x8x128xf32> to vector<8x128xf32>
    %c0_3 = arith.constant 0 : index
    %c0_4 = arith.constant 0 : index
    %c0_5 = arith.constant 0 : index
    %5 = vector.load %arg4[%c0_3, %c0_4, %c0_5] : memref<1x8x128xf32, #tpu.memory_space<vmem>>, vector<1x8x128xf32>
    %6 = vector.shape_cast %5 : vector<1x8x128xf32> to vector<8x128xf32>
    %7 = arith.subf %4, %6 : vector<8x128xf32>
    %8 = arith.mulf %4, %6 : vector<8x128xf32>
    %c4_i32 = arith.constant 4 : i32
    %9 = tpu.dynamic_rotate %8 by %c4_i32 dim 0 : vector<8x128xf32>, i32 -> vector<8x128xf32>
    %10 = arith.addf %8, %9 : vector<8x128xf32>
    %c2_i32 = arith.constant 2 : i32
    %11 = tpu.dynamic_rotate %10 by %c2_i32 dim 0 : vector<8x128xf32>, i32 -> vector<8x128xf32>
    %12 = arith.addf %10, %11 : vector<8x128xf32>
    %13 = vector.extract_strided_slice %12 {offsets = [0, 0], sizes = [2, 128], strides = [1, 1]} : vector<8x128xf32> to vector<2x128xf32>
    %14 = arith.mulf %4, %4 : vector<8x128xf32>
    %c4_i32_6 = arith.constant 4 : i32
    %15 = tpu.dynamic_rotate %14 by %c4_i32_6 dim 0 : vector<8x128xf32>, i32 -> vector<8x128xf32>
    %16 = arith.addf %14, %15 : vector<8x128xf32>
    %c2_i32_7 = arith.constant 2 : i32
    %17 = tpu.dynamic_rotate %16 by %c2_i32_7 dim 0 : vector<8x128xf32>, i32 -> vector<8x128xf32>
    %18 = arith.addf %16, %17 : vector<8x128xf32>
    %19 = vector.extract_strided_slice %18 {offsets = [0, 0], sizes = [2, 128], strides = [1, 1]} : vector<8x128xf32> to vector<2x128xf32>
    %20 = arith.mulf %6, %6 : vector<8x128xf32>
    %c4_i32_8 = arith.constant 4 : i32
    %21 = tpu.dynamic_rotate %20 by %c4_i32_8 dim 0 : vector<8x128xf32>, i32 -> vector<8x128xf32>
    %22 = arith.addf %20, %21 : vector<8x128xf32>
    %c2_i32_9 = arith.constant 2 : i32
    %23 = tpu.dynamic_rotate %22 by %c2_i32_9 dim 0 : vector<8x128xf32>, i32 -> vector<8x128xf32>
    %24 = arith.addf %22, %23 : vector<8x128xf32>
    %25 = vector.extract_strided_slice %24 {offsets = [0, 0], sizes = [2, 128], strides = [1, 1]} : vector<8x128xf32> to vector<2x128xf32>
    %26 = arith.mulf %7, %7 : vector<8x128xf32>
    %c4_i32_10 = arith.constant 4 : i32
    %27 = tpu.dynamic_rotate %26 by %c4_i32_10 dim 0 : vector<8x128xf32>, i32 -> vector<8x128xf32>
    %28 = arith.addf %26, %27 : vector<8x128xf32>
    %c2_i32_11 = arith.constant 2 : i32
    %29 = tpu.dynamic_rotate %28 by %c2_i32_11 dim 0 : vector<8x128xf32>, i32 -> vector<8x128xf32>
    %30 = arith.addf %28, %29 : vector<8x128xf32>
    %31 = vector.extract_strided_slice %30 {offsets = [0, 0], sizes = [2, 128], strides = [1, 1]} : vector<8x128xf32> to vector<2x128xf32>
    %32 = arith.mulf %19, %25 : vector<2x128xf32>
    %cst = arith.constant 1.000000e-16 : f32
    %33 = vector.broadcast %cst : f32 to vector<2x128xf32>
    %34 = arith.maximumf %32, %33 : vector<2x128xf32>
    %35 = math.rsqrt %34 : vector<2x128xf32>
    %36 = arith.mulf %13, %35 : vector<2x128xf32>
    %cst_12 = arith.constant 1.000000e+00 : f32
    %37 = vector.broadcast %cst_12 : f32 to vector<2x128xf32>
    %38 = arith.subf %37, %36 : vector<2x128xf32>
    %c0_13 = arith.constant 0 : index
    %c0_14 = arith.constant 0 : index
    %39 = vector.load %arg7[%c0_13, %c0_14] : memref<2x128xf32, #tpu.memory_space<vmem>>, vector<2x128xf32>
    %40 = arith.addf %39, %31 : vector<2x128xf32>
    %c0_15 = arith.constant 0 : index
    %c0_16 = arith.constant 0 : index
    %41 = vector.load %arg7[%c0_15, %c0_16] : memref<2x128xf32, #tpu.memory_space<vmem>>, vector<2x128xf32>
    tpu.vector_store %arg7[%c0_15, %c0_16], %40 {strides = array<i32>} : memref<2x128xf32, #tpu.memory_space<vmem>>, vector<2x128xf32>,
    %c0_17 = arith.constant 0 : index
    %c0_18 = arith.constant 0 : index
    %42 = vector.load %arg8[%c0_17, %c0_18] : memref<2x128xf32, #tpu.memory_space<vmem>>, vector<2x128xf32>
    %43 = arith.addf %42, %38 : vector<2x128xf32>
    %c0_19 = arith.constant 0 : index
    %c0_20 = arith.constant 0 : index
    %44 = vector.load %arg8[%c0_19, %c0_20] : memref<2x128xf32, #tpu.memory_space<vmem>>, vector<2x128xf32>
    tpu.vector_store %arg8[%c0_19, %c0_20], %43 {strides = array<i32>} : memref<2x128xf32, #tpu.memory_space<vmem>>, vector<2x128xf32>,
    %c0_i32_21 = arith.constant 0 : i32
    %45 = arith.cmpi eq, %arg2, %c0_i32_21 : i32
    %46 = arith.extui %45 : i1 to i32
    %c0_i32_22 = arith.constant 0 : i32
    %47 = arith.cmpi ne, %46, %c0_i32_22 : i32
    scf.if %47 {
      %c0_23 = arith.constant 0 : index
      %c0_24 = arith.constant 0 : index
      %48 = vector.load %arg7[%c0_23, %c0_24] : memref<2x128xf32, #tpu.memory_space<vmem>>, vector<2x128xf32>
      %49 = vector.shape_cast %48 : vector<2x128xf32> to vector<1x2x128xf32>
      %cst_25 = arith.constant dense<0.000000e+00> : vector<1xf32>
      %50 = vector.multi_reduction <add>, %49, %cst_25 [1, 2] : vector<1x2x128xf32> to vector<1xf32>
      %51 = vector.shape_cast %50 : vector<1xf32> to vector<1x1x1xf32>
      %52 = vector.extract %51[0, 0, 0] : f32 from vector<1x1x1xf32>
      %53 = vector.broadcast %52 : f32 to vector<1x1x128xf32>
      %c0_26 = arith.constant 0 : index
      %c0_27 = arith.constant 0 : index
      %c0_28 = arith.constant 0 : index
      %54 = vector.load %arg5[%c0_26, %c0_27, %c0_28] : memref<1x1x128xf32, #tpu.memory_space<vmem>>, vector<1x1x128xf32>
      tpu.vector_store %arg5[%c0_26, %c0_27, %c0_28], %53 {strides = array<i32>} : memref<1x1x128xf32, #tpu.memory_space<vmem>>, vector<1x1x128xf32>,
      %c0_29 = arith.constant 0 : index
      %c0_30 = arith.constant 0 : index
      %55 = vector.load %arg8[%c0_29, %c0_30] : memref<2x128xf32, #tpu.memory_space<vmem>>, vector<2x128xf32>
      %56 = vector.shape_cast %55 : vector<2x128xf32> to vector<1x2x128xf32>
      %cst_31 = arith.constant dense<0.000000e+00> : vector<1xf32>
      %57 = vector.multi_reduction <add>, %56, %cst_31 [1, 2] : vector<1x2x128xf32> to vector<1xf32>
      %58 = vector.shape_cast %57 : vector<1xf32> to vector<1x1x1xf32>
      %59 = vector.extract %58[0, 0, 0] : f32 from vector<1x1x1xf32>
      %60 = vector.broadcast %59 : f32 to vector<1x1x128xf32>
      %c0_32 = arith.constant 0 : index
      %c0_33 = arith.constant 0 : index
      %c0_34 = arith.constant 0 : index
      %61 = vector.load %arg6[%c0_32, %c0_33, %c0_34] : memref<1x1x128xf32, #tpu.memory_space<vmem>>, vector<1x1x128xf32>
      tpu.vector_store %arg6[%c0_32, %c0_33, %c0_34], %60 {strides = array<i32>} : memref<1x1x128xf32, #tpu.memory_space<vmem>>, vector<1x1x128xf32>,
    } else {
    }
    return
  }
  func.func @transform_0(%arg0: i32, %arg1: i32, %arg2: i32) -> (i32, i32, i32) {
    %c1_i32 = arith.constant 1 : i32
    %0 = arith.muli %arg1, %c1_i32 : i32
    %1 = arith.addi %0, %arg2 : i32
    %c0_i32 = arith.constant 0 : i32
    %c0_i32_0 = arith.constant 0 : i32
    return %arg0, %c0_i32, %1 : i32, i32, i32
  }
  func.func @transform_1(%arg0: i32, %arg1: i32, %arg2: i32) -> (i32, i32, i32) {
    %c1_i32 = arith.constant 1 : i32
    %0 = arith.muli %arg1, %c1_i32 : i32
    %1 = arith.addi %0, %arg2 : i32
    %c0_i32 = arith.constant 0 : i32
    %c0_i32_0 = arith.constant 0 : i32
    return %arg0, %c0_i32, %1 : i32, i32, i32
  }
  func.func @transform_2(%arg0: i32, %arg1: i32, %arg2: i32) -> (i32, i32, i32) {
    %c0_i32 = arith.constant 0 : i32
    %c0_i32_0 = arith.constant 0 : i32
    return %arg0, %arg1, %c0_i32 : i32, i32, i32
  }
  func.func @transform_3(%arg0: i32, %arg1: i32, %arg2: i32) -> (i32, i32, i32) {
    %c0_i32 = arith.constant 0 : i32
    %c0_i32_0 = arith.constant 0 : i32
    return %arg0, %arg1, %c0_i32 : i32, i32, i32
  }
}

</mosaic_0001>

<bundles_post_ra>
// kernel: tpu_custom_call.1
= control target key start
LH: loop header
LB: loop body
LE: loop exit
PB: predicated region body
PF: predicated region fallthrough
CT: control target
= control target key end

     0   :  { %9 = vsyncpa [#allocation5], 0  ;;  %s1059_s0 = inlined_call_operand.hbm [shape: f32[2,8,128], index: 0, kind: input, shape index: {}]   ;;  %s1060_s1 = inlined_call_operand.hbm [shape: f32[2,8,128], index: 1, kind: input, shape index: {}]   ;;  %s1061_s2 = inlined_call_operand.hbm [shape: f32[2,1,128], index: 2, kind: output, shape index: {0}]   ;;  %s1062_s3 = inlined_call_operand.hbm [shape: f32[2,1,128], index: 3, kind: output, shape index: {1}]  }
   0x1   :  { %11 = vsyncpa [#allocation5 + $0x1], 0 }
   0x2   :  { %12 = vsyncpa [#allocation8], 0 }
   0x3   :  { %14 = vsyncpa [#allocation8 + $0x1], 0 }
   0x4   :  { %15 = vsyncpa [#allocation6], 0 }
   0x5   :  { %17 = vsyncpa [#allocation6 + $0x1], 0 }
   0x6   :  { %18 = vsyncpa [#allocation11], 0 }
   0x7   :  { %20 = vsyncpa [#allocation11 + $0x1], 0  ;;  %s804_s12 = smov 0   ;;  %s806_s13 = smov 0  }
   0x8   :  { %s808_s14 = smov 0   ;;  %s810_s15 = smov 0  }
   0x9   :  { %s812_s16 = smov 0   ;;  %s814_s17 = smov 0  }
   0xa LB: > { %s505_s18 = sadd.s32 4294967295, %s777_s17   ;;  %s506_s19 = sadd.s32 4294967294, %s777_s17   ;;  %s777_s17 = sphi %s814_s17, %s26_s17   ;;  %s773_s16 = sphi %s812_s16, %s1082_s16   ;;  %s769_s15 = sphi %s810_s15, %s1081_s15   ;;  %s765_s14 = sphi %s808_s14, %s1080_s14   ;;  %s761_s13 = sphi %s806_s13, %s1079_s13   ;;  %s757_s12 = sphi %s804_s12, %s1078_s12  }
   0xb   : > { %s45_s20 = sadd.s32 1, %s773_s16  ;;  %s56_s21 = sadd.s32 1, %s765_s14 }
   0xc   : > { %p47_p0 = scmp.ge.s32.totalorder %s45_s20, 2  ;;  %p63_p1 = scmp.ne.s32.totalorder %s765_s14, %s761_s13 }
   0xd   : > { %p64_p2 = scmp.eq.s32.totalorder %s777_s17, 0  ;;  %p69_p3 = scmp.ne.s32.totalorder %s761_s13, %s757_s12 }
   0xe   : > { %s1084_s20 = smov (%p47_p0, %s45_s20), 0  ;;  %p70_p5 = scmp.eq.s32.totalorder %s505_s18, 0 }
   0xf   : > { %p845_p4 = por %p64_p2, %p63_p1  ;;  %s51_s23 = ssub.s32 %s773_s16, %s1084_s20 }
  0x10   : > { %p125_p6 = scmp.eq.s32.totalorder %s505_s18, 1  ;;  %p54_p7 = scmp.eq.s32.totalorder %s51_s23, 0 }
  0x11   : > { %p851_p8 = por %p70_p5, %p69_p3  ;;  %p131_p10 = scmp.eq.s32.totalorder %s506_s19, 1 }
  0x12   : > { %p855_p9 = por %p125_p6, %p63_p1  ;;  %p546_p13 = scmp.lt.s32.totalorder %s777_s17, 2 }
  0x13   : > { %s1066_s24 = scalar_select %p851_p8, 1, 0 }
  0x14   : > { %s1067_s25 = scalar_select %p855_p9, 1, 0 }
  0x15   : > { %s860_s26 = scalar_select %p54_p7, %s765_s14, %s56_s21  }
  0x16   : > { %p862_p11 = por %p131_p10, %p69_p3  ;;  %s869_s28 = sand.u32 1, %s765_s14  }
  0x17   : > { %s509_s29 = sshll.u32 %s869_s28, 3  ;;  %s510_s30 = sshll.u32 %s773_s16, 7 }
  0x18   : > { %s1068_s27 = scalar_select %p862_p11, 1, 0 }
  0x19   : > { %s878_s6 = scalar_lea.hbm %s1059_s0, %s510_s30  ;;  %s183_s7 = scalar_lea.vmem [#allocation4], %s509_s29 }
  0x1a   : > { %s192_s8 = sshll.u32 %s183_s7, 4  ;;  %p886_p0 = pnand %p546_p13, %p845_p4  ;;  %s882_s8 = int_to_ptr.vmem [resolvable:$true] %s192_s8 }
  0x1b   : > { %s180_s10 = scalar_lea.sflag [#allocation5], %s869_s28  ;;  %s599_s11 = scalar_lea.hbm %s878_s6, 128 }
  0x1c   : > { %p600_p3 = scmp.ne.s32.totalorder %s878_s6, %s599_s11  ;;  %p601_p5 = pneg %p886_p0 }
  0x1d   : > { %s604_s21 = scalar_lea.hbm %s1059_s0, 256  ;;  %p605_p4 = scmp.lt.u32.totalorder %s878_s6, %s1059_s0 }
  0x1e   : > { %p602_p6 = pnand %p601_p5, %p600_p3  ;;  %p606_p10 = scmp.lt.u32.totalorder %s604_s21, %s599_s11 }
  0x1f   : > { %p608_p12 = scmp.lt.u32.totalorder %s599_s11, %s878_s6 }
  0x20   : > { %p603_p7 = pneg %p602_p6  ;;  %p607_p13 = por %p606_p10, %p605_p4 }
  0x22   : > { %p609_p1 = por %p608_p12, %p607_p13 }
  0x24   : > { %p610_p2 = pnand %p609_p1, %p603_p7 }
  0x26   : > { %613 = shalt.err (!%p610_p2)
}
  0x27   : > { %s614_s4 = scalar_lea.vmem %s882_s8, 128  ;;  %s779_s5 = smov [#allocation4]  }
  0x28   : > { %p615_p3 = scmp.ne.s32.totalorder %s882_s8, %s614_s4  ;;  %s619_s7 = sshll.u32 %s779_s5, 4  ;;  %s620_s7 = int_to_ptr.vmem [resolvable:$false] %s619_s7 }
  0x29   : > { %s621_s18 = scalar_lea.vmem %s620_s7, 256  ;;  %p622_p9 = scmp.lt.s32.totalorder %s882_s8, %s620_s7 }
  0x2a   : > { %p617_p6 = pnand %p615_p3, %p601_p5  ;;  %p623_p4 = scmp.lt.s32.totalorder %s621_s18, %s614_s4 }
  0x2c   : > { %p618_p11 = pneg %p617_p6  ;;  %p624_p10 = por %p623_p4, %p622_p9 }
  0x2e   : > { %p625_p12 = pnand %p624_p10, %p618_p11 }
  0x30   : > { %628 = shalt.err (!%p625_p12)
}
  0x31   : > { %535 = dma.hbm_to_vmem [thread:$0]  (!%p886_p0), %s878_s6, 128, %s882_s8, %s180_s10  }
  0x32   : > { %p1070_p1 = scmp.lt.s32.totalorder %s777_s17, 3  ;;  %p1071_p2 = scmp.ge.s32.totalorder %s777_s17, 1 }
  0x33   : > { %s931_s22 = scalar_lea.hbm %s1060_s1, %s510_s30  ;;  %s203_s23 = scalar_lea.vmem [#allocation7], %s509_s29 }
  0x34   : > { %p922_p7 = pnand %p1071_p2, %p1070_p1  ;;  %s212_s4 = sshll.u32 %s203_s23, 4  ;;  %s213_s4 = int_to_ptr.vmem [resolvable:$true] %s212_s4 }
  0x35   : > { %s200_s6 = scalar_lea.sflag [#allocation8], %s869_s28  ;;  %s629_s8 = scalar_lea.hbm %s931_s22, 128 }
  0x36   : > { %s1072_s11 = scalar_select %p922_p7, 1, 0 }
  0x37   : > { %p630_p9 = scmp.ne.s32.totalorder %s931_s22, %s629_s8  ;;  %s634_s30 = scalar_lea.hbm %s1060_s1, 256 }
  0x38   : > { %p635_p3 = scmp.lt.u32.totalorder %s931_s22, %s1060_s1  ;;  %p636_p6 = scmp.lt.u32.totalorder %s634_s30, %s629_s8 }
  0x39   : > { %p632_p11 = pnand %p630_p9, %p601_p5  ;;  %p638_p10 = scmp.lt.u32.totalorder %s629_s8, %s931_s22 }
  0x3a   : > { %p637_p4 = por %p636_p6, %p635_p3 }
  0x3b   : > { %p633_p13 = pneg %p632_p11 }
  0x3c   : > { %p639_p12 = por %p638_p10, %p637_p4 }
  0x3e   : > { %p640_p1 = pnand %p639_p12, %p633_p13 }
  0x40   : > { %643 = shalt.err (!%p640_p1)
}
  0x41   : > { %s644_s28 = scalar_lea.vmem %s213_s4, 128  ;;  %s780_s29 = smov [#allocation7]  }
  0x42   : > { %p645_p2 = scmp.ne.s32.totalorder %s213_s4, %s644_s28  ;;  %s649_s19 = sshll.u32 %s780_s29, 4  ;;  %s650_s19 = int_to_ptr.vmem [resolvable:$false] %s649_s19 }
  0x43   : > { %s651_s21 = scalar_lea.vmem %s650_s19, 256  ;;  %p652_p8 = scmp.lt.s32.totalorder %s213_s4, %s650_s19 }
  0x44   : > { %p647_p9 = pnand %p645_p2, %p601_p5  ;;  %p653_p7 = scmp.lt.s32.totalorder %s651_s21, %s644_s28 }
  0x46   : > { %p648_p11 = pneg %p647_p9  ;;  %p654_p3 = por %p653_p7, %p652_p8 }
  0x48   : > { %p655_p6 = pnand %p654_p3, %p648_p11 }
  0x4a   : > { %658 = shalt.err (!%p655_p6)
}
  0x4b   : > { %538 = dma.hbm_to_vmem [thread:$0]  (!%p886_p0), %s931_s22, 128, %s213_s4, %s200_s6  }
  0x4c   : > { %p1073_p13 = scmp.ne.s32.totalorder %s1072_s11, 0 }
  0x4d   : > { %s958_s23 = sand.u32 (!%p1073_p13), 1, %s761_s13   ;;  %p1074_p5 = scmp.ne.s32.totalorder (!%p1073_p13), %s1066_s24, 0 }
  0x4e   : > { %221 = sbr.rel (%p1073_p13) target bundleno = 356 (0x164), region = 28  ;;  %s514_s8 = sshll.u32 (!%p1073_p13), %s958_s23, 3 }
  0x4f   : > { %s224_s10 = scalar_lea.sflag (!%p1073_p13), [#allocation5], %s958_s23  ;;  %s227_s5 = scalar_lea.vmem (!%p1073_p13), [#allocation4], %s514_s8 }
  0x55   : > { %740 = dma.done.wait (%p1074_p5), %s224_s10, 128  }
  0x56   : > { %742 = vsyncadd (%p1074_p5), %s224_s10, 4294967168  ;;  %s233_s9 = scalar_lea.sflag [#allocation8], %s958_s23  ;;  %s236_s22 = scalar_lea.vmem [#allocation7], %s514_s8 }
  0x57   : > { %744 = dma.done.wait (%p1074_p5), %s233_s9, 128  }
  0x58   : > { %746 = vsyncadd (%p1074_p5), %s233_s9, 4294967168  ;;  %v781_v0 = vmov 0.0   ;;  %v275_v1 = vld [vmem:[%s227_s5] sm:$0xff]  ;;  %v276_v2 = vld [vmem:[%s236_s22] sm:$0xff]  ;;  %vm313_vm0 = vcmask 1041408   ;;  %s516_s24 = sshll.u32 %s769_s15, 4 }
  0x59   : > { %273 = vst [vmem:[#allocation2] sm:$0x3] %v781_v0  ;;  %274 = vst [vmem:[#allocation3] sm:$0x3] %v781_v0  ;;  %v277_v3 = vsub.f32 %v275_v1, %v276_v2  ;;  %v283_v4 = vmul.f32 %v275_v1, %v275_v1  ;;  %v288_v5 = vmul.f32 %v276_v2, %v276_v2  ;;  %s260_s11 = scalar_lea.vmem [#allocation9], %s958_s23  ;;  %s978_s7 = scalar_lea.hbm %s1061_s2, %s516_s24 }
  0x5a   : > { %v278_v12 = vmul.f32 %v276_v2, %v275_v1  ;;  %s357_s4 = sshll.u32 %s260_s11, 4  ;;  %s340_s28 = scalar_lea.sflag [#allocation6], %s958_s23  ;;  %s980_s4 = int_to_ptr.vmem [resolvable:$true] %s357_s4 }
  0x5b   : > { %v284_v6 = vrot.slane %v283_v4, 4  ;;  %v289_v7 = vrot.slane %v288_v5, 4  ;;  %v293_v8 = vmul.f32 %v277_v3, %v277_v3  ;;  %s659_s29 = scalar_lea.vmem %s980_s4, 16  ;;  %p1075_p0 = scmp.ne.s32.totalorder %s1067_s25, 0 }
  0x5c   : > { %v279_v20 = vrot.slane %v278_v12, 4  ;;  %p660_p8 = scmp.ne.s32.totalorder %s980_s4, %s659_s29  ;;  %s782_s19 = smov [#allocation9]  }
  0x5d   : > { %v285_v9 = vadd.f32 %v284_v6, %v283_v4  ;;  %v290_v10 = vadd.f32 %v289_v7, %v288_v5  ;;  %v294_v11 = vrot.slane %v293_v8, 4  ;;  %s663_s21 = sshll.u32 %s782_s19, 4  ;;  %s664_s21 = int_to_ptr.vmem [resolvable:$false] %s663_s21 }
  0x5e   : > { %v280_v25 = vadd.f32 %v279_v20, %v278_v12  ;;  %p661_p7 = pnand %p660_p8, %p1075_p0  ;;  %s665_s8 = scalar_lea.vmem %s664_s21, 32 }
  0x5f   : > { %v286_v13 = vrot.slane %v285_v9, 6  ;;  %v291_v14 = vrot.slane %v290_v10, 6  ;;  %v295_v15 = vadd.f32 %v294_v11, %v293_v8  ;;  %p666_p10 = scmp.lt.s32.totalorder %s980_s4, %s664_s21  ;;  %p667_p12 = scmp.lt.s32.totalorder %s665_s8, %s659_s29 }
  0x60   : > { %v303_v19 = vld [vmem:[#allocation2] sm:$0x3]  ;;  %v281_v26 = vrot.slane %v280_v25, 6  ;;  %v306_v32 = vld [vmem:[#allocation3] sm:$0x3]  ;;  %p662_p4 = pneg %p661_p7 }
  0x61   : > { %v287_v16 = vadd.f32 %v286_v13, %v285_v9  ;;  %v292_v17 = vadd.f32 %v291_v14, %v290_v10  ;;  %v296_v18 = vrot.slane %v295_v15, 6  ;;  %p668_p1 = por %p667_p12, %p666_p10 }
  0x62   : > { %v282_v28 = vadd.f32 %v281_v26, %v280_v25 }
  0x63   : > { %v297_v21 = vadd.f32 %v296_v18, %v295_v15  ;;  %v298_v22 = vmul.f32 %v292_v17, %v287_v16  ;;  %p669_p2 = pnand %p668_p1, %p662_p4 }
  0x65   : > { %v304_v23 = vadd.f32 %v303_v19, %v297_v21  ;;  %v299_v24 = vmax.f32 %v298_v22, 1e-16 }
  0x67   : > { %305 = vst [vmem:[#allocation2] sm:$0x3] %v304_v23  ;;  %597 = vrsqrt.f32 %v299_v24 }
  0x6e   : > { %v312_v27 = vld [vmem:[#allocation2] sm:$0x3] }
  0x6f   : > { %v314_v29 = vsel %vm313_vm0, %v312_v27, 0.0 }
  0x70   : > { %315 = vadd.xlane.f32.xlu0 %v314_v29 }
  0x71   : > { %v598_v30 = vpop.eup %597 }
  0x72   : > { %v301_v31 = vmul.f32 %v598_v30, %v282_v28 }
  0x74   : > { %v302_v33 = vsub.f32 1.0, %v301_v31 }
  0x76   : > { %v307_v34 = vadd.f32 %v306_v32, %v302_v33 }
  0x78   : > { %308 = vst [vmem:[#allocation3] sm:$0x3] %v307_v34 }
  0x7f   : > { %v326_v35 = vld [vmem:[#allocation3] sm:$0x3] }
  0x80   : > { %v327_v36 = vsel %vm313_vm0, %v326_v35, 0.0 }
  0x81   : > { %328 = vadd.xlane.f32.xlu0 %v327_v36 }
  0xfd   : > { %v316_v37 = vpop.xlane.xlu0 %315 }
  0xfe   : > { %v317_v38 = vrot.slane %v316_v37, 4 }
 0x100   : > { %v318_v39 = vadd.f32 %v317_v38, %v316_v37 }
 0x102   : > { %v319_v40 = vrot.slane %v318_v39, 2 }
 0x104   : > { %v320_v41 = vadd.f32 %v319_v40, %v318_v39 }
 0x106   : > { %v321_v42 = vrot.slane %v320_v41, 1 }
 0x108   : > { %v322_v43 = vadd.f32 %v321_v42, %v320_v41 }
 0x10a   : > { %520 = vpush %v322_v43 }
 0x10e   : > { %v329_v44 = vpop.xlane.xlu0 %328 }
 0x10f   : > { %v330_v45 = vrot.slane %v329_v44, 4 }
 0x111   : > { %v331_v46 = vadd.f32 %v330_v45, %v329_v44 }
 0x113   : > { %v332_v47 = vrot.slane %v331_v46, 2 }
 0x115   : > { %v333_v48 = vadd.f32 %v332_v47, %v331_v46 }
 0x117   : > { %v334_v49 = vrot.slane %v333_v48, 1 }
 0x119   : > { %v335_v50 = vadd.f32 %v334_v49, %v333_v48 }
 0x11b   : > { %522 = vpush %v335_v50 }
 0x13b   : > { %s521_s18 = spop %520 }
 0x13c   : > { %v324_v51 = vstv %s521_s18 }
 0x13d   : > { %325 = vst [vmem:[%s260_s11] sm:$0x1] %v324_v51 }
 0x13e   : > { %672 = shalt.err (!%p669_p2)
}
 0x13f   : > { %s673_s10 = scalar_lea.hbm %s978_s7, 16  ;;  %s677_s22 = scalar_lea.hbm %s1061_s2, 32 }
 0x140   : > { %p674_p9 = scmp.ne.s32.totalorder %s978_s7, %s673_s10  ;;  %p678_p6 = scmp.lt.u32.totalorder %s978_s7, %s1061_s2 }
 0x141   : > { %p679_p13 = scmp.lt.u32.totalorder %s677_s22, %s673_s10  ;;  %p681_p8 = scmp.lt.u32.totalorder %s673_s10, %s978_s7 }
 0x142   : > { %p675_p11 = pnand %p674_p9, %p1075_p0 }
 0x143   : > { %p680_p5 = por %p679_p13, %p678_p6 }
 0x144   : > { %p676_p3 = pneg %p675_p11 }
 0x145   : > { %p682_p7 = por %p681_p8, %p680_p5 }
 0x147   : > { %p683_p4 = pnand %p682_p7, %p676_p3 }
 0x149   : > { %686 = shalt.err (!%p683_p4)
}
 0x14a   : > { %528 = dma.vmem_to_hbm [thread:$0]  (%p1075_p0), %s980_s4, 16, %s978_s7, %s340_s28  }
 0x14b   : > { %s266_s30 = scalar_lea.vmem [#allocation10], %s958_s23  ;;  %s1012_s8 = scalar_lea.hbm %s1062_s3, %s516_s24 }
 0x14c   : > { %s371_s18 = sshll.u32 %s266_s30, 4  ;;  %s523_s29 = spop %522  ;;  %s1005_s18 = int_to_ptr.vmem [resolvable:$true] %s371_s18 }
 0x14d   : > { %v337_v52 = vstv %s523_s29  ;;  %s344_s10 = scalar_lea.sflag [#allocation11], %s958_s23  ;;  %s687_s5 = scalar_lea.vmem %s1005_s18, 16 }
 0x14e   : > { %338 = vst [vmem:[%s266_s30] sm:$0x1] %v337_v52  ;;  %p688_p10 = scmp.ne.s32.totalorder %s1005_s18, %s687_s5  ;;  %s783_s4 = smov [#allocation10]  }
 0x14f   : > { %s691_s7 = sshll.u32 %s783_s4, 4  ;;  %s692_s7 = int_to_ptr.vmem [resolvable:$false] %s691_s7 }
 0x150   : > { %p689_p12 = pnand %p688_p10, %p1075_p0  ;;  %s693_s28 = scalar_lea.vmem %s692_s7, 32 }
 0x151   : > { %p694_p2 = scmp.lt.s32.totalorder %s1005_s18, %s692_s7  ;;  %p695_p9 = scmp.lt.s32.totalorder %s693_s28, %s687_s5 }
 0x152   : > { %p690_p1 = pneg %p689_p12 }
 0x153   : > { %p696_p11 = por %p695_p9, %p694_p2 }
 0x155   : > { %p697_p3 = pnand %p696_p11, %p690_p1 }
 0x157   : > { %700 = shalt.err (!%p697_p3)
}
 0x158   : > { %s701_s15 = scalar_lea.hbm %s1012_s8, 16  ;;  %s705_s9 = scalar_lea.hbm %s1062_s3, 32 }
 0x159   : > { %p702_p6 = scmp.ne.s32.totalorder %s1012_s8, %s701_s15  ;;  %p706_p8 = scmp.lt.u32.totalorder %s1012_s8, %s1062_s3 }
 0x15a   : > { %p707_p7 = scmp.lt.u32.totalorder %s705_s9, %s701_s15  ;;  %p709_p10 = scmp.lt.u32.totalorder %s701_s15, %s1012_s8 }
 0x15b   : > { %p703_p13 = pnand %p702_p6, %p1075_p0 }
 0x15c   : > { %p708_p4 = por %p707_p7, %p706_p8 }
 0x15d   : > { %p704_p5 = pneg %p703_p13 }
 0x15e   : > { %p710_p12 = por %p709_p10, %p708_p4 }
 0x160   : > { %p711_p1 = pnand %p710_p12, %p704_p5 }
 0x162   : > { %714 = shalt.err (!%p711_p1)
}
 0x163   : > { %529 = dma.vmem_to_hbm [thread:$0]  (%p1075_p0), %s1005_s18, 16, %s1012_s8, %s344_s10  }
 0x164 PF: > { %s383_s6 = sand.u32 1, %s757_s12   ;;  %p1076_p2 = scmp.ne.s32.totalorder %s1068_s27, 0 }
 0x165   : > { %p1077_p9 = scmp.ge.s32.totalorder %s777_s17, 2  ;;  %s384_s30 = scalar_lea.sflag [#allocation6], %s383_s6 }
 0x167   : > { %p540_p11 = pnand %p1077_p9, %p1076_p2 }
 0x169   : > { %748 = dma.done.wait (!%p540_p11), %s384_s30, 16  }
 0x16a   : > { %750 = vsyncadd (!%p540_p11), %s384_s30, 4294967280  ;;  %s392_s29 = scalar_lea.sflag [#allocation11], %s383_s6 }
 0x16b   : > { %752 = dma.done.wait (!%p540_p11), %s392_s29, 16  }
 0x16c   : > { %754 = vsyncadd (!%p540_p11), %s392_s29, 4294967280  ;;  %s26_s17 = sadd.s32 1, %s777_s17   ;;  %s1078_s12 = smov %s761_s13 }
 0x16d   : > { %p23_p3 = scmp.ge.s32.totalorder %s26_s17, 4   ;;  %s1079_s13 = smov %s765_s14 }
 0x16e   : > { %s1080_s14 = smov %s860_s26  ;;  %s1081_s15 = smov %s773_s16 }
 0x16f   : > { %s1082_s16 = smov %s1084_s20  ;;  %25 = sbr.rel (!%p23_p3) target bundleno = 10 (0xa), region = 111 }
 0x176   :  { %396 = vsyncpa [#allocation5], 1 }
 0x177   :  { %398 = vsyncpa [#allocation5 + $0x1], 1 }
 0x178   :  { %399 = vsyncpa [#allocation8], 1 }
 0x179   :  { %401 = vsyncpa [#allocation8 + $0x1], 1 }
 0x17a   :  { %402 = vsyncpa [#allocation6], 1 }
 0x17b   :  { %404 = vsyncpa [#allocation6 + $0x1], 1 }
 0x17c   :  { %405 = vsyncpa [#allocation11], 1 }
 0x17d   :  { %407 = vsyncpa [#allocation11 + $0x1], 1 }

</bundles_post_ra>
